<compile_context>
chip_gen: v6e
topology: v6e:2x2x1
jax: 0.10.0
libtpu: 0.0.40
codegen_flags: <defaults>
</compile_context>

<pallas_src>
import functools

import jax
import jax.numpy as jnp
from jax.experimental import pallas as pl
from jax.experimental.pallas import tpu as pltpu

EMB_DIM = 16

# vocab sizes from the PyTorch module __init__, in torch.cat output order
VOCABS = (
    ("user", 235),
    ("gender", 2),
    ("occupation", 111),
    ("zip", 526),
    ("movie", 21),
    ("genres", 50),
)
NUM_ID_FEATURES = len(VOCABS)

# row offset of each feature's vocabulary inside the fused "mega table"
ROW_OFFSETS = {}
_off = 0
for _name, _n in VOCABS:
    ROW_OFFSETS[_name] = _off
    _off += _n
TOTAL_VOCAB = _off                       # 945

LANE = 128
K_PAD = 1024                             # ceil(945/128)*128
NUM_SLABS = K_PAD // LANE                # 8
N_PAD = 128                              # lane-dense output width
AGE_COL = NUM_ID_FEATURES * EMB_DIM      # 96
OUT_DIM = AGE_COL + 1                    # 97 real output columns
ID_LANES = 8                             # packed id buffer width (6 used)


def _slab_features():
    """For each 128-row K-slab, the (static) feature indices whose vocab range
    intersects it.  Total compares = 13 instead of 6*8 = 48."""
    slabs = []
    for s in range(NUM_SLABS):
        lo, hi = s * LANE, (s + 1) * LANE
        feats = []
        off = 0
        for f, (_name, n) in enumerate(VOCABS):
            if off < hi and off + n > lo:
                feats.append(f)
            off += n
        slabs.append(tuple(feats))
    return tuple(slabs)


SLAB_FEATURES = _slab_features()


def _round_up(x, m):
    return ((x + m - 1) // m) * m


def fused_embed_kernel(ids_ref, age_ref, table_ref, out_ref):
    """ids_ref  : (TB, 8)   int32  -- 6 globally-offset ids, 2 pad lanes
       age_ref  : (TB, 1)   f32
       table_ref: (1024,128) f32 block-diagonal mega table (VMEM-resident)
       out_ref  : (TB, 128) f32 concatenated output slab."""
    tb = out_ref.shape[0]
    ids = ids_ref[...]                                        # (TB, 8) int32
    lane = jax.lax.broadcasted_iota(jnp.int32, (tb, LANE), 1)  # hoisted once

    acc = None
    for s in range(NUM_SLABS):                  # static, fully unrolled
        base = s * LANE
        feats = SLAB_FEATURES[s]
        # only the 1-3 features whose vocab range hits this slab are compared
        hit = lane == (ids[:, feats[0]:feats[0] + 1] - base)
        for f in feats[1:]:
            hit = hit | (lane == (ids[:, f:f + 1] - base))
        part = jnp.dot(hit.astype(jnp.float32),
                       table_ref[base:base + LANE, :],        # static slice
                       preferred_element_type=jnp.float32)
        acc = part if acc is None else acc + part

    # inject age post-matmul at column 96 (the table leaves that column zero)
    age = age_ref[...]                                        # (TB, 1) f32
    out_ref[...] = jnp.where(lane == AGE_COL, age, acc)


def build_mega_table(params):
    """(1024, 128) f32: feature f's vocab rows carry its embedding in columns
    [16f, 16f+16).  Built ONCE at model creation (not per forward)."""
    tab = jnp.zeros((K_PAD, N_PAD), jnp.float32)
    for f, (name, n) in enumerate(VOCABS):
        row = ROW_OFFSETS[name]
        tab = tab.at[row:row + n, f * EMB_DIM:(f + 1) * EMB_DIM].set(
            params[name].astype(jnp.float32))
    return tab


def pack_inputs(user_id, movie_id, genres, gender, age, occupation, zip_code):
    """(B, 8) int32 globally-offset ids  +  (B, 1) f32 age."""
    B = user_id.shape[0]
    oid = lambda x, name: x.reshape(B).astype(jnp.int32) + ROW_OFFSETS[name]
    ids = jnp.stack(
        [oid(user_id, "user"),
         oid(gender, "gender"),
         oid(occupation, "occupation"),
         oid(zip_code, "zip"),
         oid(movie_id, "movie"),
         oid(genres, "genres")],
        axis=-1)                                              # (B, 6)
    ids = jnp.pad(ids, ((0, 0), (0, ID_LANES - NUM_ID_FEATURES)))  # (B, 8)
    age_col = age.reshape(B, 1).astype(jnp.float32)
    return ids, age_col


@functools.partial(jax.jit, static_argnames=("block_rows",))
def _forward_impl(table, user_id, movie_id, genres, gender, age, occupation,
                  zip_code, *, block_rows):
    B = user_id.shape[0]
    ids, age_col = pack_inputs(user_id, movie_id, genres, gender, age,
                               occupation, zip_code)

    # pad batch only to a sublane multiple (8); no pad-to-tile waste
    b8 = _round_up(B, 8)
    if b8 != B:
        ids = jnp.pad(ids, ((0, b8 - B), (0, 0)))
        age_col = jnp.pad(age_col, ((0, b8 - B), (0, 0)))

    # batch tile: big enough to amortize per-step overhead, but keep >= 2
    # "parallel" grid steps when the batch allows (v7x has 2 TensorCores)
    tb = _round_up(min(block_rows, b8), 8)
    if b8 > 8 and (b8 + tb - 1) // tb < 2:
        tb = _round_up((b8 + 1) // 2, 8)
    grid = (b8 + tb - 1) // tb            # non-dividing last block is fine

    cost = pl.CostEstimate(
        flops=2 * grid * tb * K_PAD * N_PAD,
        transcendentals=0,
        bytes_accessed=b8 * (ID_LANES * 4 + 4 + N_PAD * 4) + K_PAD * N_PAD * 4)

    out = pl.pallas_call(
        fused_embed_kernel,
        out_shape=jax.ShapeDtypeStruct((b8, N_PAD), jnp.float32),
        grid_spec=pltpu.PrefetchScalarGridSpec(
            num_scalar_prefetch=0,
            grid=(grid,),
            in_specs=[
                pl.BlockSpec((tb, ID_LANES), lambda i: (i, 0)),   # ids
                pl.BlockSpec((tb, 1), lambda i: (i, 0)),          # age
                pl.BlockSpec((K_PAD, N_PAD), lambda i: (0, 0)),   # resident tbl
            ],
            out_specs=pl.BlockSpec((tb, N_PAD), lambda i: (i, 0)),
        ),
        compiler_params=pltpu.CompilerParams(
            dimension_semantics=("parallel",)),
        cost_estimate=cost,
    )(ids, age_col, table)

    # drop batch padding + lane padding (97 real columns).
    # TODO(synk): downstream layers could consume the lane-dense (B,128) slab
    # directly (fold column selection into their weights) to skip this copy.
    return out[:B, :OUT_DIM]


def make_model(params, *, block_rows=1024):
    """Build the fused table once; return a single-dispatch jitted forward."""
    table = build_mega_table(params)

    def forward(user_id, movie_id, genres, gender, age, occupation, zip_code,
                label=None):
        del label
        return _forward_impl(table, user_id, movie_id, genres, gender, age,
                             occupation, zip_code, block_rows=block_rows)

    return forward


def init_params(key):
    ks = jax.random.split(key, NUM_ID_FEATURES)
    # nn.Embedding default init: N(0, 1)
    return {name: jax.random.normal(k, (n, EMB_DIM), jnp.float32)
            for (name, n), k in zip(VOCABS, ks)}


def _reference(user_id, movie_id, genres, gender, age, occupation, zip_code,
               params):
    B = user_id.shape[0]
    return jnp.concatenate([
        params["user"][user_id.reshape(B)],
        params["gender"][gender.reshape(B)],
        params["occupation"][occupation.reshape(B)],
        params["zip"][zip_code.reshape(B)],
        params["movie"][movie_id.reshape(B)],
        params["genres"][genres.reshape(B)],
        age.reshape(B, 1).astype(jnp.float32)], axis=-1)


def _make_inputs(key, B):
    ikeys = jax.random.split(key, 7)
    sizes = dict(VOCABS)
    user_id = jax.random.randint(ikeys[0], (B,), 0, sizes["user"], jnp.int32)
    movie_id = jax.random.randint(ikeys[1], (B,), 0, sizes["movie"], jnp.int32)
    genres = jax.random.randint(ikeys[2], (B,), 0, sizes["genres"], jnp.int32)
    gender = jax.random.randint(ikeys[3], (B,), 0, sizes["gender"], jnp.int32)
    occupation = jax.random.randint(ikeys[4], (B,), 0, sizes["occupation"],
                                    jnp.int32)
    zip_code = jax.random.randint(ikeys[5], (B,), 0, sizes["zip"], jnp.int32)
    age = jax.random.uniform(ikeys[6], (B, 1), jnp.float32, 18.0, 65.0)
    return user_id, movie_id, genres, gender, age, occupation, zip_code


if __name__ == "__main__":
    key = jax.random.PRNGKey(0)
    pkey, k1, k2 = jax.random.split(key, 3)
    params = init_params(pkey)

    forward = make_model(params)                 # default tile (1024)
    forward_tiny = make_model(params, block_rows=8)

    # 1) small batch: single grid step
    B = 8
    inputs = _make_inputs(k1, B)
    out = jax.block_until_ready(forward(*inputs))
    ref = _reference(*inputs, params)
    assert out.shape == (B, OUT_DIM)
    assert jnp.allclose(out, ref, atol=1e-5), "mismatch vs reference (B=8)"

    # 2) non-multiple-of-8 batch, tiny tile: batch padding + 3 grid steps
    B2 = 20
    inputs2 = _make_inputs(k2, B2)
    out2 = jax.block_until_ready(forward_tiny(*inputs2))
    ref2 = _reference(*inputs2, params)
    assert out2.shape == (B2, OUT_DIM)
    assert jnp.allclose(out2, ref2, atol=1e-5), "mismatch vs reference (B=20)"

    # 3) same batch, default tile: >=2 parallel steps + non-dividing last block
    out3 = jax.block_until_ready(forward(*inputs2))
    assert out3.shape == (B2, OUT_DIM)
    assert jnp.allclose(out3, ref2, atol=1e-5), "mismatch vs reference (B=20, big tile)"

    print("KERNEL_OK")
</pallas_src>

<mosaic_0001>
module attributes {stable_mosaic.version = 11 : i64} {
  func.func @fused_embed_kernel(%arg0: i32, %arg1: memref<8x8xi32, #tpu.memory_space<vmem>>, %arg2: memref<8x1xf32, #tpu.memory_space<vmem>>, %arg3: memref<1024x128xf32, #tpu.memory_space<vmem>>, %arg4: memref<8x128xf32, #tpu.memory_space<vmem>>) attributes {dimension_semantics = [#tpu.dimension_semantics<parallel>], iteration_bounds = array<i64: 1>, scalar_prefetch = 0 : i64, scratch_operands = 0 : i64, tpu.core_type = #tpu.core_type<tc>, window_params = [{transform_indices = @transform_0, window_bounds = array<i64: 8, 8>}, {transform_indices = @transform_1, window_bounds = array<i64: 8, 1>}, {pipeline_mode = #tpu.pipeline_mode<synchronous>, transform_indices = @transform_2, window_bounds = array<i64: 1024, 128>}, {transform_indices = @transform_3, window_bounds = array<i64: 8, 128>}]} {
    %c0 = arith.constant 0 : index
    %c0_0 = arith.constant 0 : index
    %0 = vector.load %arg1[%c0, %c0_0] : memref<8x8xi32, #tpu.memory_space<vmem>>, vector<8x8xi32>
    %1 = tpu.iota {dimensions = array<i32: 1>} : vector<8x128xi32>
    %2 = vector.extract_strided_slice %0 {offsets = [0, 0], sizes = [8, 1], strides = [1, 1]} : vector<8x8xi32> to vector<8x1xi32>
    %c0_i32 = arith.constant 0 : i32
    %3 = vector.broadcast %c0_i32 : i32 to vector<8x1xi32>
    %4 = arith.subi %2, %3 : vector<8x1xi32>
    %5 = vector.broadcast %4 : vector<8x1xi32> to vector<8x128xi32>
    %6 = arith.cmpi eq, %1, %5 : vector<8x128xi32>
    %7 = arith.extui %6 : vector<8x128xi1> to vector<8x128xi32>
    %8 = arith.sitofp %7 : vector<8x128xi32> to vector<8x128xf32>
    %c0_1 = arith.constant 0 : index
    %c0_2 = arith.constant 0 : index
    %9 = vector.load %arg3[%c0_1, %c0_2] : memref<1024x128xf32, #tpu.memory_space<vmem>>, vector<128x128xf32>
    %cst = arith.constant dense<0.000000e+00> : vector<8x128xf32>
    %10 = tpu.matmul %8, %9, %cst {dimension_numbers = #tpu.dot_dimension_numbers<[1], [0], [0], [1], [0, 0, 1, 1], [], []>} : vector<8x128xf32>, vector<128x128xf32>, vector<8x128xf32> -> vector<8x128xf32>
    %11 = vector.extract_strided_slice %0 {offsets = [0, 0], sizes = [8, 1], strides = [1, 1]} : vector<8x8xi32> to vector<8x1xi32>
    %c128_i32 = arith.constant 128 : i32
    %12 = vector.broadcast %c128_i32 : i32 to vector<8x1xi32>
    %13 = arith.subi %11, %12 : vector<8x1xi32>
    %14 = vector.broadcast %13 : vector<8x1xi32> to vector<8x128xi32>
    %15 = arith.cmpi eq, %1, %14 : vector<8x128xi32>
    %16 = vector.extract_strided_slice %0 {offsets = [0, 1], sizes = [8, 1], strides = [1, 1]} : vector<8x8xi32> to vector<8x1xi32>
    %c128_i32_3 = arith.constant 128 : i32
    %17 = vector.broadcast %c128_i32_3 : i32 to vector<8x1xi32>
    %18 = arith.subi %16, %17 : vector<8x1xi32>
    %19 = vector.broadcast %18 : vector<8x1xi32> to vector<8x128xi32>
    %20 = arith.cmpi eq, %1, %19 : vector<8x128xi32>
    %21 = arith.ori %15, %20 : vector<8x128xi1>
    %22 = vector.extract_strided_slice %0 {offsets = [0, 2], sizes = [8, 1], strides = [1, 1]} : vector<8x8xi32> to vector<8x1xi32>
    %c128_i32_4 = arith.constant 128 : i32
    %23 = vector.broadcast %c128_i32_4 : i32 to vector<8x1xi32>
    %24 = arith.subi %22, %23 : vector<8x1xi32>
    %25 = vector.broadcast %24 : vector<8x1xi32> to vector<8x128xi32>
    %26 = arith.cmpi eq, %1, %25 : vector<8x128xi32>
    %27 = arith.ori %21, %26 : vector<8x128xi1>
    %28 = arith.extui %27 : vector<8x128xi1> to vector<8x128xi32>
    %29 = arith.sitofp %28 : vector<8x128xi32> to vector<8x128xf32>
    %c128 = arith.constant 128 : index
    %c0_5 = arith.constant 0 : index
    %30 = vector.load %arg3[%c128, %c0_5] : memref<1024x128xf32, #tpu.memory_space<vmem>>, vector<128x128xf32>
    %cst_6 = arith.constant dense<0.000000e+00> : vector<8x128xf32>
    %31 = tpu.matmul %29, %30, %cst_6 {dimension_numbers = #tpu.dot_dimension_numbers<[1], [0], [0], [1], [0, 0, 1, 1], [], []>} : vector<8x128xf32>, vector<128x128xf32>, vector<8x128xf32> -> vector<8x128xf32>
    %32 = arith.addf %10, %31 : vector<8x128xf32>
    %33 = vector.extract_strided_slice %0 {offsets = [0, 2], sizes = [8, 1], strides = [1, 1]} : vector<8x8xi32> to vector<8x1xi32>
    %c256_i32 = arith.constant 256 : i32
    %34 = vector.broadcast %c256_i32 : i32 to vector<8x1xi32>
    %35 = arith.subi %33, %34 : vector<8x1xi32>
    %36 = vector.broadcast %35 : vector<8x1xi32> to vector<8x128xi32>
    %37 = arith.cmpi eq, %1, %36 : vector<8x128xi32>
    %38 = vector.extract_strided_slice %0 {offsets = [0, 3], sizes = [8, 1], strides = [1, 1]} : vector<8x8xi32> to vector<8x1xi32>
    %c256_i32_7 = arith.constant 256 : i32
    %39 = vector.broadcast %c256_i32_7 : i32 to vector<8x1xi32>
    %40 = arith.subi %38, %39 : vector<8x1xi32>
    %41 = vector.broadcast %40 : vector<8x1xi32> to vector<8x128xi32>
    %42 = arith.cmpi eq, %1, %41 : vector<8x128xi32>
    %43 = arith.ori %37, %42 : vector<8x128xi1>
    %44 = arith.extui %43 : vector<8x128xi1> to vector<8x128xi32>
    %45 = arith.sitofp %44 : vector<8x128xi32> to vector<8x128xf32>
    %c256 = arith.constant 256 : index
    %c0_8 = arith.constant 0 : index
    %46 = vector.load %arg3[%c256, %c0_8] : memref<1024x128xf32, #tpu.memory_space<vmem>>, vector<128x128xf32>
    %cst_9 = arith.constant dense<0.000000e+00> : vector<8x128xf32>
    %47 = tpu.matmul %45, %46, %cst_9 {dimension_numbers = #tpu.dot_dimension_numbers<[1], [0], [0], [1], [0, 0, 1, 1], [], []>} : vector<8x128xf32>, vector<128x128xf32>, vector<8x128xf32> -> vector<8x128xf32>
    %48 = arith.addf %32, %47 : vector<8x128xf32>
    %49 = vector.extract_strided_slice %0 {offsets = [0, 3], sizes = [8, 1], strides = [1, 1]} : vector<8x8xi32> to vector<8x1xi32>
    %c384_i32 = arith.constant 384 : i32
    %50 = vector.broadcast %c384_i32 : i32 to vector<8x1xi32>
    %51 = arith.subi %49, %50 : vector<8x1xi32>
    %52 = vector.broadcast %51 : vector<8x1xi32> to vector<8x128xi32>
    %53 = arith.cmpi eq, %1, %52 : vector<8x128xi32>
    %54 = arith.extui %53 : vector<8x128xi1> to vector<8x128xi32>
    %55 = arith.sitofp %54 : vector<8x128xi32> to vector<8x128xf32>
    %c384 = arith.constant 384 : index
    %c0_10 = arith.constant 0 : index
    %56 = vector.load %arg3[%c384, %c0_10] : memref<1024x128xf32, #tpu.memory_space<vmem>>, vector<128x128xf32>
    %cst_11 = arith.constant dense<0.000000e+00> : vector<8x128xf32>
    %57 = tpu.matmul %55, %56, %cst_11 {dimension_numbers = #tpu.dot_dimension_numbers<[1], [0], [0], [1], [0, 0, 1, 1], [], []>} : vector<8x128xf32>, vector<128x128xf32>, vector<8x128xf32> -> vector<8x128xf32>
    %58 = arith.addf %48, %57 : vector<8x128xf32>
    %59 = vector.extract_strided_slice %0 {offsets = [0, 3], sizes = [8, 1], strides = [1, 1]} : vector<8x8xi32> to vector<8x1xi32>
    %c512_i32 = arith.constant 512 : i32
    %60 = vector.broadcast %c512_i32 : i32 to vector<8x1xi32>
    %61 = arith.subi %59, %60 : vector<8x1xi32>
    %62 = vector.broadcast %61 : vector<8x1xi32> to vector<8x128xi32>
    %63 = arith.cmpi eq, %1, %62 : vector<8x128xi32>
    %64 = arith.extui %63 : vector<8x128xi1> to vector<8x128xi32>
    %65 = arith.sitofp %64 : vector<8x128xi32> to vector<8x128xf32>
    %c512 = arith.constant 512 : index
    %c0_12 = arith.constant 0 : index
    %66 = vector.load %arg3[%c512, %c0_12] : memref<1024x128xf32, #tpu.memory_space<vmem>>, vector<128x128xf32>
    %cst_13 = arith.constant dense<0.000000e+00> : vector<8x128xf32>
    %67 = tpu.matmul %65, %66, %cst_13 {dimension_numbers = #tpu.dot_dimension_numbers<[1], [0], [0], [1], [0, 0, 1, 1], [], []>} : vector<8x128xf32>, vector<128x128xf32>, vector<8x128xf32> -> vector<8x128xf32>
    %68 = arith.addf %58, %67 : vector<8x128xf32>
    %69 = vector.extract_strided_slice %0 {offsets = [0, 3], sizes = [8, 1], strides = [1, 1]} : vector<8x8xi32> to vector<8x1xi32>
    %c640_i32 = arith.constant 640 : i32
    %70 = vector.broadcast %c640_i32 : i32 to vector<8x1xi32>
    %71 = arith.subi %69, %70 : vector<8x1xi32>
    %72 = vector.broadcast %71 : vector<8x1xi32> to vector<8x128xi32>
    %73 = arith.cmpi eq, %1, %72 : vector<8x128xi32>
    %74 = arith.extui %73 : vector<8x128xi1> to vector<8x128xi32>
    %75 = arith.sitofp %74 : vector<8x128xi32> to vector<8x128xf32>
    %c640 = arith.constant 640 : index
    %c0_14 = arith.constant 0 : index
    %76 = vector.load %arg3[%c640, %c0_14] : memref<1024x128xf32, #tpu.memory_space<vmem>>, vector<128x128xf32>
    %cst_15 = arith.constant dense<0.000000e+00> : vector<8x128xf32>
    %77 = tpu.matmul %75, %76, %cst_15 {dimension_numbers = #tpu.dot_dimension_numbers<[1], [0], [0], [1], [0, 0, 1, 1], [], []>} : vector<8x128xf32>, vector<128x128xf32>, vector<8x128xf32> -> vector<8x128xf32>
    %78 = arith.addf %68, %77 : vector<8x128xf32>
    %79 = vector.extract_strided_slice %0 {offsets = [0, 3], sizes = [8, 1], strides = [1, 1]} : vector<8x8xi32> to vector<8x1xi32>
    %c768_i32 = arith.constant 768 : i32
    %80 = vector.broadcast %c768_i32 : i32 to vector<8x1xi32>
    %81 = arith.subi %79, %80 : vector<8x1xi32>
    %82 = vector.broadcast %81 : vector<8x1xi32> to vector<8x128xi32>
    %83 = arith.cmpi eq, %1, %82 : vector<8x128xi32>
    %84 = vector.extract_strided_slice %0 {offsets = [0, 4], sizes = [8, 1], strides = [1, 1]} : vector<8x8xi32> to vector<8x1xi32>
    %c768_i32_16 = arith.constant 768 : i32
    %85 = vector.broadcast %c768_i32_16 : i32 to vector<8x1xi32>
    %86 = arith.subi %84, %85 : vector<8x1xi32>
    %87 = vector.broadcast %86 : vector<8x1xi32> to vector<8x128xi32>
    %88 = arith.cmpi eq, %1, %87 : vector<8x128xi32>
    %89 = arith.ori %83, %88 : vector<8x128xi1>
    %90 = vector.extract_strided_slice %0 {offsets = [0, 5], sizes = [8, 1], strides = [1, 1]} : vector<8x8xi32> to vector<8x1xi32>
    %c768_i32_17 = arith.constant 768 : i32
    %91 = vector.broadcast %c768_i32_17 : i32 to vector<8x1xi32>
    %92 = arith.subi %90, %91 : vector<8x1xi32>
    %93 = vector.broadcast %92 : vector<8x1xi32> to vector<8x128xi32>
    %94 = arith.cmpi eq, %1, %93 : vector<8x128xi32>
    %95 = arith.ori %89, %94 : vector<8x128xi1>
    %96 = arith.extui %95 : vector<8x128xi1> to vector<8x128xi32>
    %97 = arith.sitofp %96 : vector<8x128xi32> to vector<8x128xf32>
    %c768 = arith.constant 768 : index
    %c0_18 = arith.constant 0 : index
    %98 = vector.load %arg3[%c768, %c0_18] : memref<1024x128xf32, #tpu.memory_space<vmem>>, vector<128x128xf32>
    %cst_19 = arith.constant dense<0.000000e+00> : vector<8x128xf32>
    %99 = tpu.matmul %97, %98, %cst_19 {dimension_numbers = #tpu.dot_dimension_numbers<[1], [0], [0], [1], [0, 0, 1, 1], [], []>} : vector<8x128xf32>, vector<128x128xf32>, vector<8x128xf32> -> vector<8x128xf32>
    %100 = arith.addf %78, %99 : vector<8x128xf32>
    %101 = vector.extract_strided_slice %0 {offsets = [0, 5], sizes = [8, 1], strides = [1, 1]} : vector<8x8xi32> to vector<8x1xi32>
    %c896_i32 = arith.constant 896 : i32
    %102 = vector.broadcast %c896_i32 : i32 to vector<8x1xi32>
    %103 = arith.subi %101, %102 : vector<8x1xi32>
    %104 = vector.broadcast %103 : vector<8x1xi32> to vector<8x128xi32>
    %105 = arith.cmpi eq, %1, %104 : vector<8x128xi32>
    %106 = arith.extui %105 : vector<8x128xi1> to vector<8x128xi32>
    %107 = arith.sitofp %106 : vector<8x128xi32> to vector<8x128xf32>
    %c896 = arith.constant 896 : index
    %c0_20 = arith.constant 0 : index
    %108 = vector.load %arg3[%c896, %c0_20] : memref<1024x128xf32, #tpu.memory_space<vmem>>, vector<128x128xf32>
    %cst_21 = arith.constant dense<0.000000e+00> : vector<8x128xf32>
    %109 = tpu.matmul %107, %108, %cst_21 {dimension_numbers = #tpu.dot_dimension_numbers<[1], [0], [0], [1], [0, 0, 1, 1], [], []>} : vector<8x128xf32>, vector<128x128xf32>, vector<8x128xf32> -> vector<8x128xf32>
    %110 = arith.addf %100, %109 : vector<8x128xf32>
    %c0_22 = arith.constant 0 : index
    %c0_23 = arith.constant 0 : index
    %111 = vector.load %arg2[%c0_22, %c0_23] : memref<8x1xf32, #tpu.memory_space<vmem>>, vector<8x1xf32>
    %c96_i32 = arith.constant 96 : i32
    %112 = vector.broadcast %c96_i32 : i32 to vector<8x128xi32>
    %113 = arith.cmpi eq, %1, %112 : vector<8x128xi32>
    %114 = vector.shape_cast %111 : vector<8x1xf32> to vector<8x1xf32>
    %115 = vector.broadcast %114 : vector<8x1xf32> to vector<8x128xf32>
    %116 = arith.select %113, %115, %110 : vector<8x128xi1>, vector<8x128xf32>
    %c0_24 = arith.constant 0 : index
    %c0_25 = arith.constant 0 : index
    %117 = vector.load %arg4[%c0_24, %c0_25] : memref<8x128xf32, #tpu.memory_space<vmem>>, vector<8x128xf32>
    tpu.vector_store %arg4[%c0_24, %c0_25], %116 {strides = array<i32>} : memref<8x128xf32, #tpu.memory_space<vmem>>, vector<8x128xf32>,
    return
  }
  func.func @transform_0(%arg0: i32) -> (i32, i32) {
    %c0_i32 = arith.constant 0 : i32
    %c0_i32_0 = arith.constant 0 : i32
    return %arg0, %c0_i32 : i32, i32
  }
  func.func @transform_1(%arg0: i32) -> (i32, i32) {
    %c0_i32 = arith.constant 0 : i32
    %c0_i32_0 = arith.constant 0 : i32
    return %arg0, %c0_i32 : i32, i32
  }
  func.func @transform_2(%arg0: i32) -> (i32, i32) {
    %c0_i32 = arith.constant 0 : i32
    %c0_i32_0 = arith.constant 0 : i32
    %c0_i32_1 = arith.constant 0 : i32
    return %c0_i32, %c0_i32_0 : i32, i32
  }
  func.func @transform_3(%arg0: i32) -> (i32, i32) {
    %c0_i32 = arith.constant 0 : i32
    %c0_i32_0 = arith.constant 0 : i32
    return %arg0, %c0_i32 : i32, i32
  }
}

</mosaic_0001>

<bundles_post_ra>
// kernel: _forward_impl.1
= control target key start
LH: loop header
LB: loop body
LE: loop exit
PB: predicated region body
PF: predicated region fallthrough
CT: control target
= control target key end

     0   :  { %8 = vsyncpa [#allocation3], 0  ;;  %s1562_s0 = inlined_call_operand.vmem [shape: s32[8,8], index: 0, kind: input, shape index: {}]   ;;  %s1563_s1 = inlined_call_operand.vmem [shape: f32[8,1], index: 1, kind: input, shape index: {}]   ;;  %s1564_s2 = inlined_call_operand.hbm [shape: f32[1024,128], index: 2, kind: input, shape index: {}]   ;;  %s1565_s3 = inlined_call_operand.hbm [shape: f32[8,128], index: 3, kind: output, shape index: {}]  }
   0x1   :  { %9 = vsyncpa [#allocation4], 0  ;;  %s1336_s12 = smov [#allocation2]  }
   0x2   :  { %s19_s13 = sshll.u32 %s1336_s12, 4  ;;  %s20_s13 = int_to_ptr.vmem [resolvable:$true] %s19_s13 }
   0x3   :  { %s1300_s14 = scalar_lea.vmem %s20_s13, 16384  ;;  %p1305_p1 = scmp.lt.s32.totalorder %s20_s13, %s20_s13 }
   0x4   :  { %p1301_p0 = scmp.ne.s32.totalorder %s20_s13, %s1300_s14  ;;  %p1306_p2 = scmp.lt.s32.totalorder %s1300_s14, %s1300_s14 }
   0x6   :  { %p1307_p3 = por %p1306_p2, %p1305_p1 }
   0x8   :  { %p1308_p4 = pnand %p1307_p3, %p1301_p0 }
   0xa   :  { %1311 = shalt.err (!%p1308_p4)
}
   0xb   :  { %s1337_s15 = smov 128   ;;  %s1338_s16 = smov 8  }
   0xc   :  { %25 = dma.hbm_to_vmem [thread:$0]  %s1564_s2, 16384, %s20_s13, [#allocation3], %s1337_s15, %s1337_s15, %s1338_s16  }
   0xd   :  { %1332 = dma.done.wait [#allocation3], 16384  }
   0xe   :  { %1333 = vsyncadd [#allocation3], 4294950912  ;;  %v1339_v0 = vmov 2   ;;  %v1340_v1 = vmov 0   ;;  %v1341_v2 = vmov 0.0   ;;  %v1378_v3 = vld [vmem:[%s1562_s0] sm:$0xff]  ;;  %v30_v48 = vlaneseq }
   0xf   :  { %1284 = vset.pattern.permute.xlu1 %v1339_v0  ;;  %1282 = vset.pattern.permute.xlu0 %v1340_v1  ;;  %v53_v4 = vld [vmem:[#allocation2 + $0x78] sm:$0xff]  ;;  %v831_v6 = vadd.s32 4294967168, %v1378_v3  ;;  %v52_v7 = vld [vmem:[#allocation2 + $0x70] sm:$0xff]  ;;  %v51_v9 = vld [vmem:[#allocation2 + $0x68] sm:$0xff]  ;;  %v1342_v11 = vmov 1   ;;  %v835_v14 = vadd.s32 4294967040, %v1378_v3 }
  0x10   :  { %1024 = vmatprep.subr.mxu1 %v1341_v2  ;;  %989 = vmatprep.subr.mxu0 %v1341_v2  ;;  %v86_v5 = vld [vmem:[#allocation2 + $0xf8] sm:$0xff]  ;;  %v85_v8 = vld [vmem:[#allocation2 + $0xf0] sm:$0xff]  ;;  %v84_v10 = vld [vmem:[#allocation2 + $0xe8] sm:$0xff]  ;;  %v1343_v17 = vmov 3   ;;  %v844_v18 = vadd.s32 4294966656, %v1378_v3  ;;  %v838_v21 = vadd.s32 4294966912, %v1378_v3 }
  0x11   :  { %1025 = vmatpush3.msra.mxu1 %v53_v4  ;;  %990 = vmatpush3.msra.mxu0 %v86_v5  ;;  %v50_v12 = vld [vmem:[#allocation2 + $0x60] sm:$0xff]  ;;  %v49_v15 = vld [vmem:[#allocation2 + $0x58] sm:$0xff]  ;;  %v48_v19 = vld [vmem:[#allocation2 + $0x50] sm:$0xff]  ;;  %v841_v24 = vadd.s32 4294966784, %v1378_v3  ;;  %v847_v26 = vadd.s32 4294966528, %v1378_v3  ;;  %v1344_v27 = vmov 4  }
  0x12   :  { %1026 = vmatprep.subr.mxu1 %v1341_v2  ;;  %991 = vmatprep.subr.mxu0 %v1341_v2  ;;  %v83_v13 = vld [vmem:[#allocation2 + $0xe0] sm:$0xff]  ;;  %v82_v16 = vld [vmem:[#allocation2 + $0xd8] sm:$0xff]  ;;  %v81_v20 = vld [vmem:[#allocation2 + $0xd0] sm:$0xff]  ;;  %v1345_v36 = vmov 5   ;;  %v850_v38 = vadd.s32 4294966400, %v1378_v3  ;;  %vm1346_vm0 = vmmov 0  }
  0x13   :  { %65 = vperm.xlu1 %1284, %v831_v6   ;;  %56 = vperm.xlu0 %1282, %v831_v6   ;;  %v47_v22 = vld [vmem:[#allocation2 + $0x48] sm:$0xff]  ;;  %v46_v25 = vld [vmem:[#allocation2 + $0x40] sm:$0xff]  ;;  %v45_v29 = vld [vmem:[#allocation2 + $0x38] sm:$0xff]  ;;  %v1429_v51 = vand.u32 127, %v30_v48  ;;  %v1347_v55 = vmov 1.0  }
  0x14   :  { %1027 = vmatpush3.msra.mxu1 %v52_v7  ;;  %992 = vmatpush3.msra.mxu0 %v85_v8  ;;  %v80_v23 = vld [vmem:[#allocation2 + $0xc8] sm:$0xff]  ;;  %v79_v28 = vld [vmem:[#allocation2 + $0xc0] sm:$0xff]  ;;  %v78_v30 = vld [vmem:[#allocation2 + $0xb8] sm:$0xff] }
  0x15   :  { %1028 = vmatprep.subr.mxu1 %v1341_v2  ;;  %993 = vmatprep.subr.mxu0 %v1341_v2  ;;  %v44_v31 = vld [vmem:[#allocation2 + $0x30] sm:$0xff]  ;;  %v43_v33 = vld [vmem:[#allocation2 + $0x28] sm:$0xff]  ;;  %v42_v35 = vld [vmem:[#allocation2 + $0x20] sm:$0xff] }
  0x16   :  { %1029 = vmatpush3.msra.mxu1 %v51_v9  ;;  %994 = vmatpush3.msra.mxu0 %v84_v10  ;;  %v77_v32 = vld [vmem:[#allocation2 + $0xb0] sm:$0xff]  ;;  %v76_v34 = vld [vmem:[#allocation2 + $0xa8] sm:$0xff]  ;;  %v75_v37 = vld [vmem:[#allocation2 + $0xa0] sm:$0xff] }
  0x17   :  { %1285 = vset.pattern.permute.xlu1 %v1340_v1  ;;  %1283 = vset.pattern.permute.xlu0 %v1342_v11  ;;  %v41_v39 = vld [vmem:[#allocation2 + $0x18] sm:$0xff]  ;;  %v40_v41 = vld [vmem:[#allocation2 + $0x10] sm:$0xff]  ;;  %v39_v43 = vld [vmem:[#allocation2 + $0x8] sm:$0xff] }
  0x18   :  { %33 = vperm.xlu1 %1285, %v1378_v3   ;;  %60 = vperm.xlu0 %1283, %v831_v6   ;;  %v74_v40 = vld [vmem:[#allocation2 + $0x98] sm:$0xff]  ;;  %v73_v42 = vld [vmem:[#allocation2 + $0x90] sm:$0xff]  ;;  %v72_v44 = vld [vmem:[#allocation2 + $0x88] sm:$0xff] }
  0x19   :  { %1030 = vmatprep.subr.mxu1 %v1341_v2  ;;  %995 = vmatprep.subr.mxu0 %v1341_v2  ;;  %v38_v45 = vld [vmem:[#allocation2] sm:$0xff]  ;;  %v348_v54 = vld [vmem:[#allocation2 + $0x1f8] sm:$0xff]  ;;  %v347_v57 = vld [vmem:[#allocation2 + $0x1f0] sm:$0xff] }
  0x1a   :  { %1031 = vmatpush3.msra.mxu1 %v50_v12  ;;  %996 = vmatpush3.msra.mxu0 %v83_v13  ;;  %v71_v46 = vld [vmem:[#allocation2 + $0x80] sm:$0xff]  ;;  %v254_v56 = vld [vmem:[#allocation2 + $0x178] sm:$0xff]  ;;  %v253_v58 = vld [vmem:[#allocation2 + $0x170] sm:$0xff] }
  0x1b   :  { %1032 = vmatprep.subr.mxu1 %v1341_v2  ;;  %997 = vmatprep.subr.mxu0 %v1341_v2  ;;  %v806_v47 = vld [vmem:[%s1563_s1] sm:$0xff]  ;;  %v346_v59 = vld [vmem:[#allocation2 + $0x1e8] sm:$0xff]  ;;  %v344_v63 = vld [vmem:[#allocation2 + $0x1d8] sm:$0xff]  ;;  %s1348_s1 = smov [#allocation5]  }
  0x1c   :  { %1286 = vset.pattern.permute.xlu1 %v1339_v0  ;;  %1287 = vset.pattern.permute.xlu0 %v1343_v17  ;;  %v252_v60 = vld [vmem:[#allocation2 + $0x168] sm:$0xff]  ;;  %v345_v61 = vld [vmem:[#allocation2 + $0x1e0] sm:$0xff]  ;;  %v250_v0 = vld [vmem:[#allocation2 + $0x158] sm:$0xff]  ;;  %s821_s21 = sshll.u32 %s1348_s1, 4  ;;  %s822_s21 = int_to_ptr.vmem [resolvable:$true] %s821_s21 }
  0x1d   :  { %229 = vperm.xlu1 %1286, %v835_v14   ;;  %233 = vperm.xlu0 %1287, %v835_v14   ;;  %v251_v62 = vld [vmem:[#allocation2 + $0x160] sm:$0xff]  ;;  %v249_v3 = vld [vmem:[#allocation2 + $0x150] sm:$0xff]  ;;  %v342_v4 = vld [vmem:[#allocation2 + $0x1c8] sm:$0xff]  ;;  %s1312_s22 = scalar_lea.vmem %s822_s21, 128  ;;  %p1317_p6 = scmp.lt.s32.totalorder %s822_s21, %s822_s21 }
  0x1e   :  { %1033 = vmatpush3.msra.mxu1 %v49_v15  ;;  %998 = vmatpush3.msra.mxu0 %v82_v16  ;;  %v248_v5 = vld [vmem:[#allocation2 + $0x148] sm:$0xff]  ;;  %v341_v6 = vld [vmem:[#allocation2 + $0x1c0] sm:$0xff]  ;;  %v340_v8 = vld [vmem:[#allocation2 + $0x1b8] sm:$0xff]  ;;  %p1313_p5 = scmp.ne.s32.totalorder %s822_s21, %s1312_s22  ;;  %p1318_p7 = scmp.lt.s32.totalorder %s1312_s22, %s1312_s22 }
  0x1f   :  { %1034 = vmatprep.subr.mxu1 %v1341_v2  ;;  %999 = vmatprep.subr.mxu0 %v1341_v2  ;;  %v247_v7 = vld [vmem:[#allocation2 + $0x140] sm:$0xff]  ;;  %v246_v9 = vld [vmem:[#allocation2 + $0x138] sm:$0xff]  ;;  %v339_v10 = vld [vmem:[#allocation2 + $0x1b0] sm:$0xff] }
  0x20   :  { %1035 = vmatpush3.msra.mxu1 %v48_v19  ;;  %1000 = vmatpush3.msra.mxu0 %v81_v20  ;;  %v245_v11 = vld [vmem:[#allocation2 + $0x130] sm:$0xff]  ;;  %v338_v12 = vld [vmem:[#allocation2 + $0x1a8] sm:$0xff]  ;;  %v337_v14 = vld [vmem:[#allocation2 + $0x1a0] sm:$0xff]  ;;  %p1319_p8 = por %p1318_p7, %p1317_p6 }
  0x21   :  { %1288 = vset.pattern.permute.xlu1 %v1343_v17  ;;  %516 = vperm.xlu0 %1287, %v844_v18   ;;  %v244_v13 = vld [vmem:[#allocation2 + $0x128] sm:$0xff]  ;;  %v243_v15 = vld [vmem:[#allocation2 + $0x120] sm:$0xff]  ;;  %v336_v16 = vld [vmem:[#allocation2 + $0x198] sm:$0xff] }
  0x22   :  { %328 = vperm.xlu1 %1288, %v838_v21   ;;  %1036 = vmatprep.subr.mxu1 %v1341_v2  ;;  %v242_v18 = vld [vmem:[#allocation2 + $0x118] sm:$0xff]  ;;  %v335_v19 = vld [vmem:[#allocation2 + $0x190] sm:$0xff]  ;;  %v334_v21 = vld [vmem:[#allocation2 + $0x188] sm:$0xff]  ;;  %p1320_p9 = pnand %p1319_p8, %p1313_p5 }
  0x23   :  { %1037 = vmatpush3.msra.mxu1 %v47_v22  ;;  %1001 = vmatprep.subr.mxu0 %v1341_v2  ;;  %v241_v20 = vld [vmem:[#allocation2 + $0x110] sm:$0xff]  ;;  %v432_v48 = vld [vmem:[#allocation2 + $0x228] sm:$0xff] }
  0x24   :  { %1038 = vmatprep.subr.mxu1 %v1341_v2  ;;  %1002 = vmatpush3.msra.mxu0 %v80_v23  ;;  %v240_v23 = vld [vmem:[#allocation2 + $0x108] sm:$0xff] }
  0x25   :  { %1289 = vset.pattern.permute.xlu0 %v1344_v27  ;;  %1039 = vmatpush3.msra.mxu1 %v46_v25  ;;  %v536_v27 = vld [vmem:[#allocation2 + $0x2f8] sm:$0xff] }
  0x26   :  { %422 = vperm.xlu1 %1288, %v841_v24   ;;  %614 = vperm.xlu0 %1289, %v847_v26   ;;  %v333_v24 = vld [vmem:[#allocation2 + $0x180] sm:$0xff] }
  0x27   :  { %1003 = vmatprep.subr.mxu0 %v1341_v2  ;;  %1040 = vmatprep.subr.mxu1 %v1341_v2 }
  0x28   :  { %1004 = vmatpush3.msra.mxu0 %v79_v28  ;;  %1041 = vmatpush3.msra.mxu1 %v45_v29  ;;  %v442_v28 = vld [vmem:[#allocation2 + $0x278] sm:$0xff]  ;;  %v535_v29 = vld [vmem:[#allocation2 + $0x2f0] sm:$0xff] }
  0x29   :  { %1005 = vmatprep.subr.mxu0 %v1341_v2  ;;  %1042 = vmatprep.subr.mxu1 %v1341_v2 }
  0x2a   :  { %610 = vperm.xlu1 %1288, %v847_v26   ;;  %1006 = vmatpush3.msra.mxu0 %v78_v30  ;;  %v441_v30 = vld [vmem:[#allocation2 + $0x270] sm:$0xff] }
  0x2b   :  { %1043 = vmatpush3.msra.mxu1 %v44_v31  ;;  %1007 = vmatprep.subr.mxu0 %v1341_v2  ;;  %v534_v31 = vld [vmem:[#allocation2 + $0x2e8] sm:$0xff] }
  0x2c   :  { %1044 = vmatprep.subr.mxu1 %v1341_v2  ;;  %1008 = vmatpush3.msra.mxu0 %v77_v32  ;;  %v440_v32 = vld [vmem:[#allocation2 + $0x268] sm:$0xff] }
  0x2d   :  { %1045 = vmatpush3.msra.mxu1 %v43_v33  ;;  %1009 = vmatprep.subr.mxu0 %v1341_v2  ;;  %v533_v33 = vld [vmem:[#allocation2 + $0x2e0] sm:$0xff] }
  0x2e   :  { %1290 = vset.pattern.permute.xlu1 %v1345_v36  ;;  %1046 = vmatprep.subr.mxu1 %v1341_v2  ;;  %v438_v36 = vld [vmem:[#allocation2 + $0x258] sm:$0xff] }
  0x2f   :  { %619 = vperm.xlu1 %1290, %v847_v26   ;;  %1010 = vmatpush3.msra.mxu0 %v76_v34  ;;  %v239_v26 = vld [vmem:[#allocation2 + $0x100] sm:$0xff] }
  0x30   :  { %1047 = vmatpush3.msra.mxu1 %v42_v35  ;;  %1011 = vmatprep.subr.mxu0 %v1341_v2  ;;  %v439_v34 = vld [vmem:[#allocation2 + $0x260] sm:$0xff]  ;;  %v532_v35 = vld [vmem:[#allocation2 + $0x2d8] sm:$0xff] }
  0x31   :  { %1048 = vmatprep.subr.mxu1 %v1341_v2  ;;  %1012 = vmatpush3.msra.mxu0 %v75_v37  ;;  %v531_v37 = vld [vmem:[#allocation2 + $0x2d0] sm:$0xff] }
  0x32   :  { %1049 = vmatpush3.msra.mxu1 %v41_v39  ;;  %1013 = vmatprep.subr.mxu0 %v1341_v2  ;;  %v530_v39 = vld [vmem:[#allocation2 + $0x2c8] sm:$0xff] }
  0x33   :  { %714 = vperm.xlu1 %1290, %v850_v38   ;;  %1050 = vmatprep.subr.mxu1 %v1341_v2  ;;  %v437_v38 = vld [vmem:[#allocation2 + $0x250] sm:$0xff] }
  0x34   :  { %1014 = vmatpush3.msra.mxu0 %v74_v40  ;;  %1051 = vmatpush3.msra.mxu1 %v40_v41  ;;  %v436_v40 = vld [vmem:[#allocation2 + $0x248] sm:$0xff]  ;;  %v529_v41 = vld [vmem:[#allocation2 + $0x2c0] sm:$0xff] }
  0x35   :  { %1015 = vmatprep.subr.mxu0 %v1341_v2  ;;  %1052 = vmatprep.subr.mxu1 %v1341_v2 }
  0x36   :  { %1016 = vmatpush3.msra.mxu0 %v73_v42  ;;  %1053 = vmatpush3.msra.mxu1 %v39_v43  ;;  %v435_v42 = vld [vmem:[#allocation2 + $0x240] sm:$0xff]  ;;  %v528_v43 = vld [vmem:[#allocation2 + $0x2b8] sm:$0xff] }
  0x37   :  { %1017 = vmatprep.subr.mxu0 %v1341_v2  ;;  %1054 = vmatprep.subr.mxu1 %v1341_v2 }
  0x38   :  { %1018 = vmatpush3.msra.mxu0 %v72_v44  ;;  %1055 = vmatpush3.msra.mxu1 %v38_v45  ;;  %v434_v44 = vld [vmem:[#allocation2 + $0x238] sm:$0xff]  ;;  %v527_v45 = vld [vmem:[#allocation2 + $0x2b0] sm:$0xff] }
  0x39   :  { %1019 = vmatprep.subr.mxu0 %v1341_v2  ;;  %1056 = vmatprep.mubr.msk.f32.mxu1 %vm1346_vm0, %v1341_v2 }
  0x3a   :  { %1094 = vmatprep.subr.mxu1 %v1341_v2  ;;  %1020 = vmatpush3.msra.mxu0 %v71_v46  ;;  %v433_v46 = vld [vmem:[#allocation2 + $0x230] sm:$0xff] }
  0x3b   :  { %1021 = vmatprep.mubr.msk.f32.mxu0 %vm1346_vm0, %v1341_v2  ;;  %1059 = vmatprep.subr.mxu0 %v1341_v2 }
  0x3c   :  { %1291 = vset.pattern.permute.xlu0 %v1340_v1  ;;  %v343_v1 = vld [vmem:[#allocation2 + $0x1d0] sm:$0xff] }
  0x3d   :  { %810 = vperm.xlu0 %1291, %v806_v47   ;;  %v526_v47 = vld [vmem:[#allocation2 + $0x2a8] sm:$0xff] }
  0x8e   :  { %v57_v49 = vpop.permute.xlu0 %56  ;;  %v66_v50 = vpop.permute.xlu1 %65 }
  0x8f   :  { %vm58_vm1 = vcmp.eq.s32.totalorder %v1429_v51, %v57_v49  ;;  %vm67_vm4 = vcmp.eq.s32.totalorder %v1429_v51, %v66_v50  ;;  %v525_v49 = vld [vmem:[#allocation2 + $0x2a0] sm:$0xff] }
  0x90   :  { %v431_v50 = vld [vmem:[#allocation2 + $0x220] sm:$0xff] }
  0x93   :  { %v34_v52 = vpop.permute.xlu1 %33  ;;  %v61_v53 = vpop.permute.xlu0 %60 }
  0x94   :  { %vm35_vm2 = vcmp.eq.s32.totalorder %v1429_v51, %v34_v52  ;;  %vm62_vm3 = vcmp.eq.s32.totalorder %v1429_v51, %v61_v53  ;;  %v524_v52 = vld [vmem:[#allocation2 + $0x298] sm:$0xff] }
  0x95   :  { %vm63_vm5 = vmor %vm58_vm1, %vm62_vm3  ;;  %1057 = vmatmul.mubr.msk.f32.vlgmr.msra.gmra.mxu1 %vm35_vm2, %v1347_v55  ;;  %v430_v53 = vld [vmem:[#allocation2 + $0x218] sm:$0xff] }
  0x96   :  { %vm68_vm6 = vmor %vm63_vm5, %vm67_vm4  ;;  %1095 = vmatpush3.msra.mxu1 %v348_v54  ;;  %1126 = vmatprep.mubr.msk.f32.mxu1 %vm1346_vm0, %v1341_v2  ;;  %v523_v54 = vld [vmem:[#allocation2 + $0x290] sm:$0xff] }
  0x97   :  { %1096 = vmatprep.subr.mxu1 %v1341_v2  ;;  %1022 = vmatmul.mubr.msk.f32.vlgmr.msra.gmra.mxu0 %vm68_vm6, %v1347_v55 }
  0x98   :  { %1060 = vmatpush3.msra.mxu0 %v254_v56  ;;  %1097 = vmatpush3.msra.mxu1 %v347_v57  ;;  %v230_v17 = vpop.permute.xlu1 %229  ;;  %v234_v22 = vpop.permute.xlu0 %233  ;;  %v429_v56 = vld [vmem:[#allocation2 + $0x210] sm:$0xff]  ;;  %v522_v57 = vld [vmem:[#allocation2 + $0x288] sm:$0xff] }
  0x99   :  { %1061 = vmatprep.subr.mxu0 %v1341_v2  ;;  %1098 = vmatprep.subr.mxu1 %v1341_v2  ;;  %vm231_vm7 = vcmp.eq.s32.totalorder %v1429_v51, %v230_v17  ;;  %vm235_vm8 = vcmp.eq.s32.totalorder %v1429_v51, %v234_v22  ;;  %v632_v17 = vld [vmem:[#allocation2 + $0x338] sm:$0xff]  ;;  %v630_v22 = vld [vmem:[#allocation2 + $0x328] sm:$0xff] }
  0x9a   :  { %1062 = vmatpush3.msra.mxu0 %v253_v58  ;;  %1099 = vmatpush3.msra.mxu1 %v346_v59  ;;  %vm236_vm10 = vmor %vm231_vm7, %vm235_vm8  ;;  %v428_v58 = vld [vmem:[#allocation2 + $0x208] sm:$0xff] }
  0x9b   :  { %1063 = vmatprep.subr.mxu0 %v1341_v2  ;;  %1100 = vmatprep.subr.mxu1 %v1341_v2 }
  0x9c   :  { %1064 = vmatpush3.msra.mxu0 %v252_v60  ;;  %1101 = vmatpush3.msra.mxu1 %v345_v61  ;;  %v517_v59 = vpop.permute.xlu0 %516  ;;  %v521_v60 = vld [vmem:[#allocation2 + $0x280] sm:$0xff] }
  0x9d   :  { %1065 = vmatprep.subr.mxu0 %v1341_v2  ;;  %1102 = vmatprep.subr.mxu1 %v1341_v2  ;;  %v329_v25 = vpop.permute.xlu1 %328  ;;  %v427_v61 = vld [vmem:[#allocation2 + $0x200] sm:$0xff]  ;;  %vm518_vm11 = vcmp.eq.s32.totalorder %v1429_v51, %v517_v59 }
  0x9e   :  { %1066 = vmatpush3.msra.mxu0 %v251_v62  ;;  %1103 = vmatpush3.msra.mxu1 %v344_v63  ;;  %vm330_vm9 = vcmp.eq.s32.totalorder %v1429_v51, %v329_v25  ;;  %v734_v62 = vld [vmem:[#allocation2 + $0x3f8] sm:$0xff] }
  0x9f   :  { %1067 = vmatprep.subr.mxu0 %v1341_v2  ;;  %1104 = vmatprep.subr.mxu1 %v1341_v2 }
  0xa0   :  { %1068 = vmatpush3.msra.mxu0 %v250_v0  ;;  %1105 = vmatpush3.msra.mxu1 %v343_v1  ;;  %v640_v0 = vld [vmem:[#allocation2 + $0x378] sm:$0xff]  ;;  %v733_v1 = vld [vmem:[#allocation2 + $0x3f0] sm:$0xff] }
  0xa1   :  { %1069 = vmatprep.subr.mxu0 %v1341_v2  ;;  %1106 = vmatprep.subr.mxu1 %v1341_v2  ;;  %v423_v63 = vpop.permute.xlu1 %422 }
  0xa2   :  { %1070 = vmatpush3.msra.mxu0 %v249_v3  ;;  %1107 = vmatpush3.msra.mxu1 %v342_v4  ;;  %vm424_vm12 = vcmp.eq.s32.totalorder %v1429_v51, %v423_v63  ;;  %v639_v3 = vld [vmem:[#allocation2 + $0x370] sm:$0xff]  ;;  %v732_v4 = vld [vmem:[#allocation2 + $0x3e8] sm:$0xff] }
  0xa3   :  { %1071 = vmatprep.subr.mxu0 %v1341_v2  ;;  %1108 = vmatprep.subr.mxu1 %v1341_v2 }
  0xa4   :  { %1072 = vmatpush3.msra.mxu0 %v248_v5  ;;  %1109 = vmatpush3.msra.mxu1 %v341_v6  ;;  %v638_v5 = vld [vmem:[#allocation2 + $0x368] sm:$0xff]  ;;  %v731_v6 = vld [vmem:[#allocation2 + $0x3e0] sm:$0xff] }
  0xa5   :  { %1073 = vmatprep.subr.mxu0 %v1341_v2  ;;  %1110 = vmatprep.subr.mxu1 %v1341_v2 }
  0xa6   :  { %1074 = vmatpush3.msra.mxu0 %v247_v7  ;;  %1111 = vmatpush3.msra.mxu1 %v340_v8  ;;  %v637_v7 = vld [vmem:[#allocation2 + $0x360] sm:$0xff]  ;;  %v730_v8 = vld [vmem:[#allocation2 + $0x3d8] sm:$0xff] }
  0xa7   :  { %1075 = vmatprep.subr.mxu0 %v1341_v2  ;;  %1112 = vmatprep.subr.mxu1 %v1341_v2 }
  0xa8   :  { %1076 = vmatpush3.msra.mxu0 %v246_v9  ;;  %1113 = vmatpush3.msra.mxu1 %v339_v10  ;;  %v636_v9 = vld [vmem:[#allocation2 + $0x358] sm:$0xff]  ;;  %v729_v10 = vld [vmem:[#allocation2 + $0x3d0] sm:$0xff] }
  0xa9   :  { %1114 = vmatprep.subr.mxu1 %v1341_v2  ;;  %1077 = vmatprep.subr.mxu0 %v1341_v2 }
  0xaa   :  { %1078 = vmatpush3.msra.mxu0 %v245_v11  ;;  %1115 = vmatpush3.msra.mxu1 %v338_v12  ;;  %v635_v11 = vld [vmem:[#allocation2 + $0x350] sm:$0xff]  ;;  %v728_v12 = vld [vmem:[#allocation2 + $0x3c8] sm:$0xff] }
  0xab   :  { %1079 = vmatprep.subr.mxu0 %v1341_v2  ;;  %1116 = vmatprep.subr.mxu1 %v1341_v2 }
  0xac   :  { %1080 = vmatpush3.msra.mxu0 %v244_v13  ;;  %1117 = vmatpush3.msra.mxu1 %v337_v14  ;;  %v634_v13 = vld [vmem:[#allocation2 + $0x348] sm:$0xff]  ;;  %v727_v14 = vld [vmem:[#allocation2 + $0x3c0] sm:$0xff] }
  0xad   :  { %1118 = vmatprep.subr.mxu1 %v1341_v2  ;;  %1081 = vmatprep.subr.mxu0 %v1341_v2 }
  0xae   :  { %1082 = vmatpush3.msra.mxu0 %v243_v15  ;;  %1119 = vmatpush3.msra.mxu1 %v336_v16  ;;  %v633_v15 = vld [vmem:[#allocation2 + $0x340] sm:$0xff]  ;;  %v726_v16 = vld [vmem:[#allocation2 + $0x3b8] sm:$0xff] }
  0xaf   :  { %1083 = vmatprep.subr.mxu0 %v1341_v2  ;;  %1120 = vmatprep.subr.mxu1 %v1341_v2 }
  0xb0   :  { %1084 = vmatpush3.msra.mxu0 %v242_v18  ;;  %1121 = vmatpush3.msra.mxu1 %v335_v19  ;;  %v611_v18 = vpop.permute.xlu1 %610  ;;  %v725_v19 = vld [vmem:[#allocation2 + $0x3b0] sm:$0xff] }
  0xb1   :  { %1122 = vmatprep.subr.mxu1 %v1341_v2  ;;  %1085 = vmatprep.subr.mxu0 %v1341_v2  ;;  %vm612_vm13 = vcmp.eq.s32.totalorder %v1429_v51, %v611_v18 }
  0xb2   :  { %1086 = vmatpush3.msra.mxu0 %v241_v20  ;;  %1123 = vmatpush3.msra.mxu1 %v334_v21  ;;  %v631_v20 = vld [vmem:[#allocation2 + $0x330] sm:$0xff]  ;;  %v724_v21 = vld [vmem:[#allocation2 + $0x3a8] sm:$0xff] }
  0xb3   :  { %1087 = vmatprep.subr.mxu0 %v1341_v2  ;;  %1124 = vmatprep.subr.mxu1 %v1341_v2 }
  0xb4   :  { %1088 = vmatpush3.msra.mxu0 %v240_v23  ;;  %1125 = vmatpush3.msra.mxu1 %v333_v24  ;;  %v723_v23 = vld [vmem:[#allocation2 + $0x3a0] sm:$0xff]  ;;  %v620_v25 = vpop.permute.xlu1 %619 }
  0xb5   :  { %1164 = vmatprep.subr.mxu1 %v1341_v2  ;;  %1089 = vmatprep.subr.mxu0 %v1341_v2  ;;  %v629_v24 = vld [vmem:[#allocation2 + $0x320] sm:$0xff]  ;;  %vm621_vm2 = vcmp.eq.s32.totalorder %v1429_v51, %v620_v25 }
  0xb6   :  { %1090 = vmatpush3.msra.mxu0 %v239_v26  ;;  %1091 = vmatprep.mubr.msk.f32.mxu0 %vm1346_vm0, %v1341_v2  ;;  %v722_v26 = vld [vmem:[#allocation2 + $0x398] sm:$0xff] }
  0xb7   :  { %1127 = vmatmul.mubr.msk.f32.vlgmr.msra.gmra.mxu1 %vm330_vm9, %v1347_v55  ;;  %1092 = vmatmul.mubr.msk.f32.vlgmr.msra.gmra.mxu0 %vm236_vm10, %v1347_v55 }
  0xb8   :  { %1165 = vmatpush3.msra.mxu1 %v536_v27  ;;  %1129 = vmatprep.subr.mxu0 %v1341_v2  ;;  %v628_v27 = vld [vmem:[#allocation2 + $0x318] sm:$0xff] }
  0xb9   :  { %1166 = vmatprep.subr.mxu1 %v1341_v2  ;;  %1130 = vmatpush3.msra.mxu0 %v442_v28  ;;  %v615_v28 = vpop.permute.xlu0 %614 }
  0xba   :  { %1167 = vmatpush3.msra.mxu1 %v535_v29  ;;  %1131 = vmatprep.subr.mxu0 %v1341_v2  ;;  %v721_v29 = vld [vmem:[#allocation2 + $0x390] sm:$0xff]  ;;  %vm616_vm14 = vcmp.eq.s32.totalorder %v1429_v51, %v615_v28 }
  0xbb   :  { %1168 = vmatprep.subr.mxu1 %v1341_v2  ;;  %1132 = vmatpush3.msra.mxu0 %v441_v30  ;;  %v627_v30 = vld [vmem:[#allocation2 + $0x310] sm:$0xff]  ;;  %vm617_vm1 = vmor %vm612_vm13, %vm616_vm14 }
  0xbc   :  { %1169 = vmatpush3.msra.mxu1 %v534_v31  ;;  %1133 = vmatprep.subr.mxu0 %v1341_v2  ;;  %v720_v31 = vld [vmem:[#allocation2 + $0x388] sm:$0xff]  ;;  %vm622_vm3 = vmor %vm617_vm1, %vm621_vm2 }
  0xbd   :  { %1170 = vmatprep.subr.mxu1 %v1341_v2  ;;  %1134 = vmatpush3.msra.mxu0 %v440_v32  ;;  %v715_v32 = vpop.permute.xlu1 %714 }
  0xbe   :  { %1171 = vmatpush3.msra.mxu1 %v533_v33  ;;  %1135 = vmatprep.subr.mxu0 %v1341_v2  ;;  %v626_v33 = vld [vmem:[#allocation2 + $0x308] sm:$0xff]  ;;  %vm716_vm15 = vcmp.eq.s32.totalorder %v1429_v51, %v715_v32 }
  0xbf   :  { %1172 = vmatprep.subr.mxu1 %v1341_v2  ;;  %1136 = vmatpush3.msra.mxu0 %v439_v34  ;;  %v719_v34 = vld [vmem:[#allocation2 + $0x380] sm:$0xff] }
  0xc0   :  { %1173 = vmatpush3.msra.mxu1 %v532_v35  ;;  %1137 = vmatprep.subr.mxu0 %v1341_v2  ;;  %v625_v35 = vld [vmem:[#allocation2 + $0x300] sm:$0xff] }
  0xc1   :  { %1174 = vmatprep.subr.mxu1 %v1341_v2  ;;  %1138 = vmatpush3.msra.mxu0 %v438_v36 }
  0xc2   :  { %1175 = vmatpush3.msra.mxu1 %v531_v37  ;;  %1139 = vmatprep.subr.mxu0 %v1341_v2 }
  0xc3   :  { %1176 = vmatprep.subr.mxu1 %v1341_v2  ;;  %1140 = vmatpush3.msra.mxu0 %v437_v38 }
  0xc4   :  { %1177 = vmatpush3.msra.mxu1 %v530_v39  ;;  %1141 = vmatprep.subr.mxu0 %v1341_v2 }
  0xc5   :  { %1178 = vmatprep.subr.mxu1 %v1341_v2  ;;  %1142 = vmatpush3.msra.mxu0 %v436_v40 }
  0xc6   :  { %1179 = vmatpush3.msra.mxu1 %v529_v41  ;;  %1143 = vmatprep.subr.mxu0 %v1341_v2 }
  0xc7   :  { %1180 = vmatprep.subr.mxu1 %v1341_v2  ;;  %1144 = vmatpush3.msra.mxu0 %v435_v42 }
  0xc8   :  { %1181 = vmatpush3.msra.mxu1 %v528_v43  ;;  %1145 = vmatprep.subr.mxu0 %v1341_v2 }
  0xc9   :  { %1182 = vmatprep.subr.mxu1 %v1341_v2  ;;  %1146 = vmatpush3.msra.mxu0 %v434_v44 }
  0xca   :  { %1183 = vmatpush3.msra.mxu1 %v527_v45  ;;  %1147 = vmatprep.subr.mxu0 %v1341_v2 }
  0xcb   :  { %1184 = vmatprep.subr.mxu1 %v1341_v2  ;;  %1148 = vmatpush3.msra.mxu0 %v433_v46 }
  0xcc   :  { %1185 = vmatpush3.msra.mxu1 %v526_v47  ;;  %1149 = vmatprep.subr.mxu0 %v1341_v2 }
  0xcd   :  { %1186 = vmatprep.subr.mxu1 %v1341_v2  ;;  %1150 = vmatpush3.msra.mxu0 %v432_v48 }
  0xce   :  { %1187 = vmatpush3.msra.mxu1 %v525_v49  ;;  %1151 = vmatprep.subr.mxu0 %v1341_v2 }
  0xcf   :  { %1188 = vmatprep.subr.mxu1 %v1341_v2  ;;  %1152 = vmatpush3.msra.mxu0 %v431_v50 }
  0xd0   :  { %1189 = vmatpush3.msra.mxu1 %v524_v52  ;;  %1153 = vmatprep.subr.mxu0 %v1341_v2 }
  0xd1   :  { %1190 = vmatprep.subr.mxu1 %v1341_v2  ;;  %1154 = vmatpush3.msra.mxu0 %v430_v53 }
  0xd2   :  { %1191 = vmatpush3.msra.mxu1 %v523_v54  ;;  %1155 = vmatprep.subr.mxu0 %v1341_v2 }
  0xd3   :  { %1192 = vmatprep.subr.mxu1 %v1341_v2  ;;  %1156 = vmatpush3.msra.mxu0 %v429_v56 }
  0xd4   :  { %1193 = vmatpush3.msra.mxu1 %v522_v57  ;;  %1157 = vmatprep.subr.mxu0 %v1341_v2 }
  0xd5   :  { %1194 = vmatprep.subr.mxu1 %v1341_v2  ;;  %1158 = vmatpush3.msra.mxu0 %v428_v58  ;;  %v811_v58 = vpop.permute.xlu0 %810 }
  0xd6   :  { %1195 = vmatpush3.msra.mxu1 %v521_v60  ;;  %1196 = vmatprep.mubr.msk.f32.mxu1 %vm1346_vm0, %v1341_v2 }
  0xd7   :  { %1159 = vmatprep.subr.mxu0 %v1341_v2  ;;  %1197 = vmatmul.mubr.msk.f32.vlgmr.msra.gmra.mxu1 %vm518_vm11, %v1347_v55 }
  0xd8   :  { %1234 = vmatprep.subr.mxu1 %v1341_v2  ;;  %1160 = vmatpush3.msra.mxu0 %v427_v61 }
  0xd9   :  { %1161 = vmatprep.mubr.msk.f32.mxu0 %vm1346_vm0, %v1341_v2  ;;  %1235 = vmatpush3.msra.mxu1 %v734_v62 }
  0xda   :  { %1162 = vmatmul.mubr.msk.f32.vlgmr.msra.gmra.mxu0 %vm424_vm12, %v1347_v55  ;;  %1199 = vmatprep.subr.mxu0 %v1341_v2 }
  0xdb   :  { %1236 = vmatprep.subr.mxu1 %v1341_v2  ;;  %1200 = vmatpush3.msra.mxu0 %v640_v0 }
  0xdc   :  { %1237 = vmatpush3.msra.mxu1 %v733_v1  ;;  %1201 = vmatprep.subr.mxu0 %v1341_v2 }
  0xdd   :  { %1238 = vmatprep.subr.mxu1 %v1341_v2  ;;  %1202 = vmatpush3.msra.mxu0 %v639_v3 }
  0xde   :  { %1239 = vmatpush3.msra.mxu1 %v732_v4  ;;  %1203 = vmatprep.subr.mxu0 %v1341_v2 }
  0xdf   :  { %1240 = vmatprep.subr.mxu1 %v1341_v2  ;;  %1204 = vmatpush3.msra.mxu0 %v638_v5 }
  0xe0   :  { %1241 = vmatpush3.msra.mxu1 %v731_v6  ;;  %1205 = vmatprep.subr.mxu0 %v1341_v2 }
  0xe1   :  { %1242 = vmatprep.subr.mxu1 %v1341_v2  ;;  %1206 = vmatpush3.msra.mxu0 %v637_v7 }
  0xe2   :  { %1243 = vmatpush3.msra.mxu1 %v730_v8  ;;  %1207 = vmatprep.subr.mxu0 %v1341_v2 }
  0xe3   :  { %1244 = vmatprep.subr.mxu1 %v1341_v2  ;;  %1208 = vmatpush3.msra.mxu0 %v636_v9 }
  0xe4   :  { %1245 = vmatpush3.msra.mxu1 %v729_v10  ;;  %1209 = vmatprep.subr.mxu0 %v1341_v2 }
  0xe5   :  { %1246 = vmatprep.subr.mxu1 %v1341_v2  ;;  %1210 = vmatpush3.msra.mxu0 %v635_v11 }
  0xe6   :  { %1247 = vmatpush3.msra.mxu1 %v728_v12  ;;  %1211 = vmatprep.subr.mxu0 %v1341_v2 }
  0xe7   :  { %1248 = vmatprep.subr.mxu1 %v1341_v2  ;;  %1212 = vmatpush3.msra.mxu0 %v634_v13 }
  0xe8   :  { %1249 = vmatpush3.msra.mxu1 %v727_v14  ;;  %1213 = vmatprep.subr.mxu0 %v1341_v2 }
  0xe9   :  { %1250 = vmatprep.subr.mxu1 %v1341_v2  ;;  %1214 = vmatpush3.msra.mxu0 %v633_v15 }
  0xea   :  { %1251 = vmatpush3.msra.mxu1 %v726_v16  ;;  %1215 = vmatprep.subr.mxu0 %v1341_v2 }
  0xeb   :  { %1252 = vmatprep.subr.mxu1 %v1341_v2  ;;  %1216 = vmatpush3.msra.mxu0 %v632_v17 }
  0xec   :  { %1253 = vmatpush3.msra.mxu1 %v725_v19  ;;  %1217 = vmatprep.subr.mxu0 %v1341_v2 }
  0xed   :  { %1254 = vmatprep.subr.mxu1 %v1341_v2  ;;  %1218 = vmatpush3.msra.mxu0 %v631_v20 }
  0xee   :  { %1255 = vmatpush3.msra.mxu1 %v724_v21  ;;  %1219 = vmatprep.subr.mxu0 %v1341_v2 }
  0xef   :  { %1256 = vmatprep.subr.mxu1 %v1341_v2  ;;  %1220 = vmatpush3.msra.mxu0 %v630_v22 }
  0xf0   :  { %1257 = vmatpush3.msra.mxu1 %v723_v23  ;;  %1221 = vmatprep.subr.mxu0 %v1341_v2 }
  0xf1   :  { %1258 = vmatprep.subr.mxu1 %v1341_v2  ;;  %1222 = vmatpush3.msra.mxu0 %v629_v24 }
  0xf2   :  { %1259 = vmatpush3.msra.mxu1 %v722_v26  ;;  %1223 = vmatprep.subr.mxu0 %v1341_v2 }
  0xf3   :  { %1260 = vmatprep.subr.mxu1 %v1341_v2  ;;  %1224 = vmatpush3.msra.mxu0 %v628_v27 }
  0xf4   :  { %1261 = vmatpush3.msra.mxu1 %v721_v29  ;;  %1225 = vmatprep.subr.mxu0 %v1341_v2 }
  0xf5   :  { %1262 = vmatprep.subr.mxu1 %v1341_v2  ;;  %1226 = vmatpush3.msra.mxu0 %v627_v30 }
  0xf6   :  { %1263 = vmatpush3.msra.mxu1 %v720_v31  ;;  %1227 = vmatprep.subr.mxu0 %v1341_v2 }
  0xf7   :  { %1264 = vmatprep.subr.mxu1 %v1341_v2  ;;  %1228 = vmatpush3.msra.mxu0 %v626_v33 }
  0xf8   :  { %1265 = vmatpush3.msra.mxu1 %v719_v34  ;;  %1266 = vmatprep.mubr.msk.f32.mxu1 %vm1346_vm0, %v1341_v2 }
  0xf9   :  { %1229 = vmatprep.subr.mxu0 %v1341_v2  ;;  %1267 = vmatmul.mubr.msk.f32.vlgmr.msra.gmra.mxu1 %vm716_vm15, %v1347_v55 }
  0xfa   :  { %1230 = vmatpush3.msra.mxu0 %v625_v35  ;;  %1231 = vmatprep.mubr.msk.f32.mxu0 %vm1346_vm0, %v1341_v2  ;;  %vm807_vm0 = vcmp.eq.s32.totalorder %v1429_v51, 96 }
  0xfb   :  { %1232 = vmatmul.mubr.msk.f32.vlgmr.msra.gmra.mxu0 %vm622_vm3, %v1347_v55 }
 0x155   :  { %v223_v36 = vpop.f32.mrf.mxu1 }
 0x157   :  { %v153_v37 = vpop.f32.mrf.mxu0  ;;  %v1058_v38 = vpop.f32.mrf.mxu1 }
 0x158   :  { %v224_v39 = vadd.f32 %v223_v36, %v153_v37 }
 0x159   :  { %v1023_v40 = vpop.f32.mrf.mxu0 }
 0x177   :  { %v321_v41 = vpop.f32.mrf.mxu0  ;;  %v415_v42 = vpop.f32.mrf.mxu1 }
 0x178   :  { %v325_v49 = vadd.f32 %v321_v41, %v224_v39 }
 0x179   :  { %v1093_v43 = vpop.f32.mrf.mxu0  ;;  %v1128_v44 = vpop.f32.mrf.mxu1 }
 0x17a   :  { %v419_v50 = vadd.f32 %v415_v42, %v325_v49 }
 0x197   :  { %v603_v45 = vpop.f32.mrf.mxu1 }
 0x199   :  { %v1198_v46 = vpop.f32.mrf.mxu1 }
 0x19a   :  { %v509_v47 = vpop.f32.mrf.mxu0 }
 0x19b   :  { %v513_v52 = vadd.f32 %v509_v47, %v419_v50 }
 0x19c   :  { %v1163_v48 = vpop.f32.mrf.mxu0 }
 0x19d   :  { %v607_v2 = vadd.f32 %v603_v45, %v513_v52 }
 0x1b9   :  { %v801_v53 = vpop.f32.mrf.mxu1 }
 0x1bb   :  { %v707_v54 = vpop.f32.mrf.mxu0  ;;  %v1268_v55 = vpop.f32.mrf.mxu1 }
 0x1bc   :  { %v711_v56 = vadd.f32 %v707_v54, %v607_v2 }
 0x1bd   :  { %v1233_v57 = vpop.f32.mrf.mxu0 }
 0x1be   :  { %v805_v59 = vadd.f32 %v801_v53, %v711_v56 }
 0x1c0   :  { %v813_v60 = vsel %vm807_vm0, %v811_v58, %v805_v59 }
 0x1c1   :  { %814 = vst [vmem:[#allocation5] sm:$0xff] %v813_v60 }
 0x1c2   :  { %1323 = shalt.err (!%p1320_p9)
}
 0x1c3   :  { %824 = dma.vmem_to_hbm [thread:$0]  %s822_s21, 128, %s1565_s3, [#allocation4]  }
 0x1c4   :  { %1334 = dma.done.wait [#allocation4], 128  }
 0x1c5   :  { %1335 = vsyncadd [#allocation4], 4294967168 }
 0x1c6   :  { %828 = vsyncpa [#allocation3], 1 }
 0x1c7   :  { %829 = vsyncpa [#allocation4], 1 }

</bundles_post_ra>
